<compile_context>
chip_gen: v6e
topology: v6e:2x2x1
jax: 0.10.0
libtpu: 0.0.40
codegen_flags: <defaults>
</compile_context>

<pallas_src>
import jax
import jax.numpy as jnp
from jax.experimental import pallas as pl
from jax.experimental.pallas import tpu as pltpu

_SUBLANE = 8


def _round_up(x, m):
    return (x + m - 1) // m * m


def _cdiv(a, b):
    return -(-a // b)


def _actor_kernel(x_ref, w1_ref, b1_ref, w2_ref, b2_ref, w3_ref, b3_ref,
                  probs_ref):
    # In-kernel bf16 cast of the activation tile (VPU work hidden under MXU);
    # accumulation, bias add, ReLU and softmax stay in f32.
    x = x_ref[...].astype(jnp.bfloat16)

    # layer 1
    h1 = jnp.dot(x, w1_ref[...], preferred_element_type=jnp.float32)
    h1 = jnp.maximum(h1 + b1_ref[...], 0.0)

    # layer 2
    h2 = jnp.dot(h1.astype(jnp.bfloat16), w2_ref[...],
                 preferred_element_type=jnp.float32)
    h2 = jnp.maximum(h2 + b2_ref[...], 0.0)

    # layer 3 (logits over the true, unpadded action dimension)
    logits = jnp.dot(h2.astype(jnp.bfloat16), w3_ref[...],
                     preferred_element_type=jnp.float32)
    logits = logits + b3_ref[...]

    # numerically-stable softmax along the lane axis
    m = jnp.max(logits, axis=-1, keepdims=True)
    e = jnp.exp(logits - m)
    denom = jnp.sum(e, axis=-1, keepdims=True)
    probs_ref[...] = (e * pl.reciprocal(denom, approx=True)).astype(
        probs_ref.dtype)


def actor_forward(state, params, *, block_m=2048):
    """Runs the Actor MLP + softmax in one Pallas call.

    Args:
      state:  [B, state_size] float32
      params: dict with w1 [state_size,128], b1 [1,128], w2 [128,256],
              b2 [1,256], w3 [256,action_size], b3 [1,action_size]
      block_m: upper bound on the batch tile (rows per grid step).
    Returns:
      probs: [B, action_size] float32 (Categorical probabilities)
    """
    B, S = state.shape
    H1 = params["w1"].shape[1]
    H2 = params["w2"].shape[1]
    A = params["w3"].shape[1]

    # --- batch tiling ------------------------------------------------------
    # Balance tiles so padding waste is <= 7 rows per tile, and guarantee at
    # least 2 grid steps (when the batch is big enough to split) so v7x's two
    # TensorCores can each take a share of the "parallel" axis.
    num_tiles = _cdiv(B, block_m)
    if num_tiles < 2 and B > 2 * _SUBLANE:
        num_tiles = 2
    tm = _round_up(_cdiv(B, num_tiles), _SUBLANE)
    B_pad = tm * num_tiles

    x = state                      # f32; cast to bf16 inside the kernel
    if B_pad != B:
        x = jnp.pad(x, ((0, B_pad - B), (0, 0)))

    # Tiny parameter casts (weights are ~160 KB total; negligible).
    w1 = params["w1"].astype(jnp.bfloat16)
    w2 = params["w2"].astype(jnp.bfloat16)
    w3 = params["w3"].astype(jnp.bfloat16)
    b1 = params["b1"]              # biases stay f32
    b2 = params["b2"]
    b3 = params["b3"]

    # Advisory cost estimate for XLA's scheduler.
    flops = 2 * B_pad * (S * H1 + H1 * H2 + H2 * A)
    bytes_accessed = (
        x.size * 4                                         # f32 state
        + (w1.size + w2.size + w3.size) * 2                # bf16 weights
        + (b1.size + b2.size + b3.size) * 4                # f32 biases
        + B_pad * A * 4)                                   # f32 output

    def _const_spec(shape):
        # full-array block, constant index_map -> stays VMEM-resident
        return pl.BlockSpec(shape, lambda i: (0, 0))

    probs = pl.pallas_call(
        _actor_kernel,
        out_shape=jax.ShapeDtypeStruct((B_pad, A), jnp.float32),
        grid=(num_tiles,),
        in_specs=[
            pl.BlockSpec((tm, S), lambda i: (i, 0)),   # state tile
            _const_spec((S, H1)),
            _const_spec((1, H1)),
            _const_spec((H1, H2)),
            _const_spec((1, H2)),
            _const_spec((H2, A)),
            _const_spec((1, A)),
        ],
        out_specs=pl.BlockSpec((tm, A), lambda i: (i, 0)),
        compiler_params=pltpu.CompilerParams(
            dimension_semantics=("parallel",)),
        cost_estimate=pl.CostEstimate(
            flops=flops,
            transcendentals=B_pad * (A + 1),
            bytes_accessed=bytes_accessed),
    )(x, w1, b1, w2, b2, w3, b3)

    if B_pad != B:
        probs = probs[:B]
    return probs


def init_params(key, state_size, action_size):
    """Deterministic synthetic parameter init (PyTorch Linear shapes,
    stored transposed for x @ W)."""
    ks = jax.random.split(key, 6)

    def uniform(k, shape, fan_in):
        bound = 1.0 / jnp.sqrt(float(fan_in))
        return jax.random.uniform(k, shape, jnp.float32, -bound, bound)

    return {
        "w1": uniform(ks[0], (state_size, 128), state_size),
        "b1": uniform(ks[1], (1, 128), state_size),
        "w2": uniform(ks[2], (128, 256), 128),
        "b2": uniform(ks[3], (1, 256), 128),
        "w3": uniform(ks[4], (256, action_size), 256),
        "b3": uniform(ks[5], (1, action_size), 256),
    }


if __name__ == "__main__":
    state_size = 16
    action_size = 8
    batch = 4

    key = jax.random.PRNGKey(0)
    pkey, xkey = jax.random.split(key)

    params = init_params(pkey, state_size, action_size)
    state = jax.random.normal(xkey, (batch, state_size), jnp.float32)

    probs = actor_forward(state, params)
    probs = jax.block_until_ready(probs)

    # sanity: rows of a Categorical must sum to 1 (tolerance loosened for
    # bf16 matmuls + approx reciprocal)
    row_sums = jnp.sum(probs, axis=-1)
    assert probs.shape == (batch, action_size)
    assert bool(jnp.all(jnp.abs(row_sums - 1.0) < 5e-3))
    assert bool(jnp.all(probs >= 0.0))

    print("KERNEL_OK")
</pallas_src>

<mosaic_0001>
module attributes {stable_mosaic.version = 11 : i64} {
  func.func @_actor_kernel(%arg0: i32, %arg1: memref<8x16xf32, #tpu.memory_space<vmem>>, %arg2: memref<16x128xbf16, #tpu.memory_space<vmem>>, %arg3: memref<1x128xf32, #tpu.memory_space<vmem>>, %arg4: memref<128x256xbf16, #tpu.memory_space<vmem>>, %arg5: memref<1x256xf32, #tpu.memory_space<vmem>>, %arg6: memref<256x8xbf16, #tpu.memory_space<vmem>>, %arg7: memref<1x8xf32, #tpu.memory_space<vmem>>, %arg8: memref<8x8xf32, #tpu.memory_space<vmem>>) attributes {dimension_semantics = [#tpu.dimension_semantics<parallel>], iteration_bounds = array<i64: 1>, scalar_prefetch = 0 : i64, scratch_operands = 0 : i64, tpu.core_type = #tpu.core_type<tc>, window_params = [{transform_indices = @transform_0, window_bounds = array<i64: 8, 16>}, {pipeline_mode = #tpu.pipeline_mode<synchronous>, transform_indices = @transform_1, window_bounds = array<i64: 16, 128>}, {pipeline_mode = #tpu.pipeline_mode<synchronous>, transform_indices = @transform_2, window_bounds = array<i64: 1, 128>}, {pipeline_mode = #tpu.pipeline_mode<synchronous>, transform_indices = @transform_3, window_bounds = array<i64: 128, 256>}, {pipeline_mode = #tpu.pipeline_mode<synchronous>, transform_indices = @transform_4, window_bounds = array<i64: 1, 256>}, {pipeline_mode = #tpu.pipeline_mode<synchronous>, transform_indices = @transform_5, window_bounds = array<i64: 256, 8>}, {pipeline_mode = #tpu.pipeline_mode<synchronous>, transform_indices = @transform_6, window_bounds = array<i64: 1, 8>}, {transform_indices = @transform_7, window_bounds = array<i64: 8, 8>}]} {
    %c0 = arith.constant 0 : index
    %c0_0 = arith.constant 0 : index
    %0 = vector.load %arg1[%c0, %c0_0] : memref<8x16xf32, #tpu.memory_space<vmem>>, vector<8x16xf32>
    %1 = arith.truncf %0 : vector<8x16xf32> to vector<8x16xbf16>
    %c0_1 = arith.constant 0 : index
    %c0_2 = arith.constant 0 : index
    %2 = vector.load %arg2[%c0_1, %c0_2] : memref<16x128xbf16, #tpu.memory_space<vmem>>, vector<16x128xbf16>
    %cst = arith.constant dense<0.000000e+00> : vector<8x128xf32>
    %3 = tpu.matmul %1, %2, %cst {dimension_numbers = #tpu.dot_dimension_numbers<[1], [0], [0], [1], [0, 0, 1, 1], [], []>} : vector<8x16xbf16>, vector<16x128xbf16>, vector<8x128xf32> -> vector<8x128xf32>
    %c0_3 = arith.constant 0 : index
    %c0_4 = arith.constant 0 : index
    %4 = vector.load %arg3[%c0_3, %c0_4] : memref<1x128xf32, #tpu.memory_space<vmem>>, vector<1x128xf32>
    %5 = vector.broadcast %4 : vector<1x128xf32> to vector<8x128xf32>
    %6 = arith.addf %3, %5 : vector<8x128xf32>
    %cst_5 = arith.constant 0.000000e+00 : f32
    %7 = vector.broadcast %cst_5 : f32 to vector<8x128xf32>
    %8 = arith.maximumf %6, %7 : vector<8x128xf32>
    %9 = arith.truncf %8 : vector<8x128xf32> to vector<8x128xbf16>
    %c0_6 = arith.constant 0 : index
    %c0_7 = arith.constant 0 : index
    %10 = vector.load %arg4[%c0_6, %c0_7] : memref<128x256xbf16, #tpu.memory_space<vmem>>, vector<128x256xbf16>
    %cst_8 = arith.constant dense<0.000000e+00> : vector<8x256xf32>
    %11 = tpu.matmul %9, %10, %cst_8 {dimension_numbers = #tpu.dot_dimension_numbers<[1], [0], [0], [1], [0, 0, 1, 1], [], []>} : vector<8x128xbf16>, vector<128x256xbf16>, vector<8x256xf32> -> vector<8x256xf32>
    %c0_9 = arith.constant 0 : index
    %c0_10 = arith.constant 0 : index
    %12 = vector.load %arg5[%c0_9, %c0_10] : memref<1x256xf32, #tpu.memory_space<vmem>>, vector<1x256xf32>
    %13 = vector.broadcast %12 : vector<1x256xf32> to vector<8x256xf32>
    %14 = arith.addf %11, %13 : vector<8x256xf32>
    %cst_11 = arith.constant 0.000000e+00 : f32
    %15 = vector.broadcast %cst_11 : f32 to vector<8x256xf32>
    %16 = arith.maximumf %14, %15 : vector<8x256xf32>
    %17 = arith.truncf %16 : vector<8x256xf32> to vector<8x256xbf16>
    %c0_12 = arith.constant 0 : index
    %c0_13 = arith.constant 0 : index
    %18 = vector.load %arg6[%c0_12, %c0_13] : memref<256x8xbf16, #tpu.memory_space<vmem>>, vector<256x8xbf16>
    %cst_14 = arith.constant dense<0.000000e+00> : vector<8x8xf32>
    %19 = tpu.matmul %17, %18, %cst_14 {dimension_numbers = #tpu.dot_dimension_numbers<[1], [0], [0], [1], [0, 0, 1, 1], [], []>} : vector<8x256xbf16>, vector<256x8xbf16>, vector<8x8xf32> -> vector<8x8xf32>
    %c0_15 = arith.constant 0 : index
    %c0_16 = arith.constant 0 : index
    %20 = vector.load %arg7[%c0_15, %c0_16] : memref<1x8xf32, #tpu.memory_space<vmem>>, vector<1x8xf32>
    %21 = vector.broadcast %20 : vector<1x8xf32> to vector<8x8xf32>
    %22 = arith.addf %19, %21 : vector<8x8xf32>
    %cst_17 = arith.constant dense<0xFF800000> : vector<8xf32>
    %23 = vector.multi_reduction <maximumf>, %22, %cst_17 [1] : vector<8x8xf32> to vector<8xf32>
    %24 = vector.shape_cast %23 : vector<8xf32> to vector<8x1xf32>
    %25 = vector.broadcast %24 : vector<8x1xf32> to vector<8x8xf32>
    %26 = arith.subf %22, %25 : vector<8x8xf32>
    %27 = math.exp %26 : vector<8x8xf32>
    %cst_18 = arith.constant dense<0.000000e+00> : vector<8xf32>
    %28 = vector.multi_reduction <add>, %27, %cst_18 [1] : vector<8x8xf32> to vector<8xf32>
    %29 = vector.shape_cast %28 : vector<8xf32> to vector<8x1xf32>
    %30 = tpu.reciprocal %29 {approx = true} : vector<8x1xf32> -> vector<8x1xf32>
    %31 = vector.broadcast %30 : vector<8x1xf32> to vector<8x8xf32>
    %32 = arith.mulf %27, %31 : vector<8x8xf32>
    %c0_19 = arith.constant 0 : index
    %c0_20 = arith.constant 0 : index
    %33 = vector.load %arg8[%c0_19, %c0_20] : memref<8x8xf32, #tpu.memory_space<vmem>>, vector<8x8xf32>
    tpu.vector_store %arg8[%c0_19, %c0_20], %32 {strides = array<i32>} : memref<8x8xf32, #tpu.memory_space<vmem>>, vector<8x8xf32>,
    return
  }
  func.func @transform_0(%arg0: i32) -> (i32, i32) {
    %c0_i32 = arith.constant 0 : i32
    %c0_i32_0 = arith.constant 0 : i32
    return %arg0, %c0_i32 : i32, i32
  }
  func.func @transform_1(%arg0: i32) -> (i32, i32) {
    %c0_i32 = arith.constant 0 : i32
    %c0_i32_0 = arith.constant 0 : i32
    %c0_i32_1 = arith.constant 0 : i32
    return %c0_i32, %c0_i32_0 : i32, i32
  }
  func.func @transform_2(%arg0: i32) -> (i32, i32) {
    %c0_i32 = arith.constant 0 : i32
    %c0_i32_0 = arith.constant 0 : i32
    %c0_i32_1 = arith.constant 0 : i32
    return %c0_i32, %c0_i32_0 : i32, i32
  }
  func.func @transform_3(%arg0: i32) -> (i32, i32) {
    %c0_i32 = arith.constant 0 : i32
    %c0_i32_0 = arith.constant 0 : i32
    %c0_i32_1 = arith.constant 0 : i32
    return %c0_i32, %c0_i32_0 : i32, i32
  }
  func.func @transform_4(%arg0: i32) -> (i32, i32) {
    %c0_i32 = arith.constant 0 : i32
    %c0_i32_0 = arith.constant 0 : i32
    %c0_i32_1 = arith.constant 0 : i32
    return %c0_i32, %c0_i32_0 : i32, i32
  }
  func.func @transform_5(%arg0: i32) -> (i32, i32) {
    %c0_i32 = arith.constant 0 : i32
    %c0_i32_0 = arith.constant 0 : i32
    %c0_i32_1 = arith.constant 0 : i32
    return %c0_i32, %c0_i32_0 : i32, i32
  }
  func.func @transform_6(%arg0: i32) -> (i32, i32) {
    %c0_i32 = arith.constant 0 : i32
    %c0_i32_0 = arith.constant 0 : i32
    %c0_i32_1 = arith.constant 0 : i32
    return %c0_i32, %c0_i32_0 : i32, i32
  }
  func.func @transform_7(%arg0: i32) -> (i32, i32) {
    %c0_i32 = arith.constant 0 : i32
    %c0_i32_0 = arith.constant 0 : i32
    return %arg0, %c0_i32 : i32, i32
  }
}

</mosaic_0001>

<bundles_post_ra>
// kernel: tpu_custom_call.1
= control target key start
LH: loop header
LB: loop body
LE: loop exit
PB: predicated region body
PF: predicated region fallthrough
CT: control target
= control target key end

     0   :  { %12 = vsyncpa [#allocation3], 0  ;;  %s824_s0 = inlined_call_operand.vmem [shape: f32[8,16], index: 0, kind: input, shape index: {}]   ;;  %s825_s1 = inlined_call_operand.hbm [shape: bf16[16,128], index: 1, kind: input, shape index: {}]   ;;  %s826_s2 = inlined_call_operand.vmem [shape: f32[1,128], index: 2, kind: input, shape index: {}]   ;;  %s827_s3 = inlined_call_operand.vmem [shape: bf16[128,256], index: 3, kind: input, shape index: {}]   ;;  %s828_s4 = inlined_call_operand.hbm [shape: f32[1,256], index: 4, kind: input, shape index: {}]   ;;  %s829_s5 = inlined_call_operand.vmem [shape: bf16[256,8], index: 5, kind: input, shape index: {}]   ;;  %s830_s6 = inlined_call_operand.vmem [shape: f32[1,8], index: 6, kind: input, shape index: {}]   ;;  %s831_s7 = inlined_call_operand.hbm [shape: f32[8,8], index: 7, kind: output, shape index: {}]  }
   0x1   :  { %13 = vsyncpa [#allocation6], 0 }
   0x2   :  { %14 = vsyncpa [#allocation4], 0  ;;  %s659_s24 = smov [#allocation2]  }
   0x3   :  { %s22_s25 = sshll.u32 %s659_s24, 4  ;;  %s23_s25 = int_to_ptr.vmem [resolvable:$true] %s22_s25 }
   0x4   :  { %s601_s26 = scalar_lea.vmem %s23_s25, 128  ;;  %p606_p1 = scmp.lt.s32.totalorder %s23_s25, %s23_s25 }
   0x5   :  { %p602_p0 = scmp.ne.s32.totalorder %s23_s25, %s601_s26  ;;  %p607_p2 = scmp.lt.s32.totalorder %s601_s26, %s601_s26 }
   0x7   :  { %p608_p3 = por %p607_p2, %p606_p1 }
   0x9   :  { %p609_p4 = pnand %p608_p3, %p602_p0 }
   0xb   :  { %612 = shalt.err (!%p609_p4)
}
   0xc   :  { %s660_s27 = smov 64   ;;  %s661_s28 = smov 4  }
   0xd   :  { %28 = dma.hbm_to_vmem [thread:$0]  %s825_s1, 128, %s23_s25, [#allocation3], %s660_s27, %s660_s27, %s661_s28  }
   0xe   :  { %s662_s8 = smov [#allocation5]  }
   0xf   :  { %s39_s9 = sshll.u32 %s662_s8, 4  ;;  %s40_s9 = int_to_ptr.vmem [resolvable:$true] %s39_s9 }
  0x10   :  { %s621_s10 = scalar_lea.vmem %s40_s9, 32  ;;  %p626_p6 = scmp.lt.s32.totalorder %s40_s9, %s40_s9 }
  0x11   :  { %p622_p5 = scmp.ne.s32.totalorder %s40_s9, %s621_s10  ;;  %p627_p7 = scmp.lt.s32.totalorder %s621_s10, %s621_s10 }
  0x13   :  { %p628_p8 = por %p627_p7, %p626_p6 }
  0x15   :  { %p629_p9 = pnand %p628_p8, %p622_p5 }
  0x17   :  { %632 = shalt.err (!%p629_p9)
}
  0x18   :  { %42 = dma.hbm_to_vmem [thread:$0]  %s828_s4, 32, %s40_s9, [#allocation6]  }
  0x19   :  { %653 = dma.done.wait [#allocation3], 128  }
  0x1a   :  { %654 = vsyncadd [#allocation3], 4294967168 }
  0x1b   :  { %655 = dma.done.wait [#allocation6], 32  }
  0x1c   :  { %656 = vsyncadd [#allocation6], 4294967264  ;;  %v663_v0 = vmov 0.0   ;;  %vm664_vm0 = vmmov 0   ;;  %v548_v1 = vld [vmem:[#allocation2] sm:$0xff]   ;;  %vm71_vm1 = vcmask 130048   ;;  %v135_v45 = vlaneseq }
  0x1d   :  { %534 = vmatprep.subr.bf16.mxu0 %v663_v0  ;;  %536 = vmatprep.mubr.msk.bf16.mxu0 %vm664_vm0, %v663_v0  ;;  %v54_v2 = vld [vmem:[%s824_s0] sm:$0xff]  ;;  %v549_v4 = vld [vmem:[%s827_s3 + $0x74] ss:$8 sps:$4 sm:$0xff]   ;;  %v551_v5 = vld [vmem:[%s827_s3 + $0x70] ss:$8 sps:$4 sm:$0xff]   ;;  %v665_v20 = vmov 0  }
  0x1e   :  { %535 = vmatpush3.bf16.msra.mxu0 %v548_v1  ;;  %v55_v3 = vpack.c.bf16 %v54_v2, %v54_v2  ;;  %v552_v6 = vld [vmem:[%s827_s3 + $0x64] ss:$8 sps:$4 sm:$0xff]   ;;  %225 = vmatprep.subr.bf16.mxu1 %v549_v4  ;;  %v554_v7 = vld [vmem:[%s827_s3 + $0x60] ss:$8 sps:$4 sm:$0xff]   ;;  %v555_v8 = vld [vmem:[%s827_s3 + $0x54] ss:$8 sps:$4 sm:$0xff]  }
  0x1f   :  { %226 = vmatpush1.bf16.msra.mxu1 %v551_v5  ;;  %v557_v9 = vld [vmem:[%s827_s3 + $0x50] ss:$8 sps:$4 sm:$0xff]   ;;  %v558_v10 = vld [vmem:[%s827_s3 + $0x44] ss:$8 sps:$4 sm:$0xff]   ;;  %v560_v11 = vld [vmem:[%s827_s3 + $0x40] ss:$8 sps:$4 sm:$0xff]   ;;  %257 = vmatprep.mubr.bf16.mxu1 %v665_v20 }
  0x20   :  { %227 = vmatprep.subr.bf16.mxu1 %v552_v6  ;;  %v561_v12 = vld [vmem:[%s827_s3 + $0x34] ss:$8 sps:$4 sm:$0xff]   ;;  %v563_v13 = vld [vmem:[%s827_s3 + $0x30] ss:$8 sps:$4 sm:$0xff]   ;;  %v564_v14 = vld [vmem:[%s827_s3 + $0x24] ss:$8 sps:$4 sm:$0xff]  }
  0x21   :  { %537 = vmatmul.mubr.msk.bf16.vlgmr.msra.gmra.mxu0 %vm71_vm1, %v55_v3  ;;  %v566_v15 = vld [vmem:[%s827_s3 + $0x20] ss:$8 sps:$4 sm:$0xff]   ;;  %v567_v16 = vld [vmem:[%s827_s3 + $0x14] ss:$8 sps:$4 sm:$0xff]   ;;  %v569_v17 = vld [vmem:[%s827_s3 + $0x10] ss:$8 sps:$4 sm:$0xff]  }
  0x22   :  { %v570_v18 = vld [vmem:[%s827_s3 + $0x4] ss:$8 sps:$4 sm:$0xff]   ;;  %v572_v19 = vld [vmem:[%s827_s3] ss:$8 sps:$4 sm:$0xff]   ;;  %v573_v21 = vld [vmem:[%s829_s5 + $0x78] sm:$0xff]   ;;  %v136_v46 = vshrl.u32 %v135_v45, 7 }
  0x23   :  { %228 = vmatpush1.bf16.msra.mxu1 %v554_v7  ;;  %v574_v22 = vld [vmem:[%s829_s5 + $0x38] sm:$0xff]   ;;  %v575_v23 = vld [vmem:[%s829_s5 + $0x70] sm:$0xff]   ;;  %512 = vmatprep.subr.bf16.mxu0 %v573_v21  ;;  %v577_v25 = vld [vmem:[%s829_s5 + $0x68] sm:$0xff]   ;;  %vm445_vm2 = vcmask 64512   ;;  %s666_s3 = smov [#allocation7]  }
  0x24   :  { %229 = vmatprep.subr.bf16.mxu1 %v555_v8  ;;  %513 = vmatpush3.bf16.msra.mxu0 %v574_v22  ;;  %v576_v24 = vld [vmem:[%s829_s5 + $0x30] sm:$0xff]   ;;  %v578_v26 = vld [vmem:[%s829_s5 + $0x28] sm:$0xff]   ;;  %v579_v27 = vld [vmem:[%s829_s5 + $0x60] sm:$0xff]   ;;  %v137_v47 = vsub.s32 0, %v136_v46  ;;  %v141_v49 = vsub.s32 1, %v136_v46 }
  0x25   :  { %514 = vmatprep.subr.bf16.mxu0 %v575_v23  ;;  %v580_v28 = vld [vmem:[%s829_s5 + $0x20] sm:$0xff]   ;;  %v581_v29 = vld [vmem:[%s829_s5 + $0x58] sm:$0xff]   ;;  %v583_v31 = vld [vmem:[%s829_s5 + $0x50] sm:$0xff]  }
  0x26   :  { %v582_v30 = vld [vmem:[%s829_s5 + $0x18] sm:$0xff]   ;;  %v584_v32 = vld [vmem:[%s829_s5 + $0x10] sm:$0xff]   ;;  %v474_v33 = vld [vmem:[%s826_s2] ss:$0 sm:$0xff] }
  0x27   :  { %230 = vmatpush1.bf16.msra.mxu1 %v557_v9  ;;  %v585_v41 = vld [vmem:[%s829_s5 + $0x48] sm:$0xff]   ;;  %v587_v43 = vld [vmem:[%s829_s5 + $0x40] sm:$0xff]  }
  0x28   :  { %231 = vmatprep.subr.bf16.mxu1 %v558_v10  ;;  %515 = vmatpush3.bf16.msra.mxu0 %v576_v24  ;;  %v586_v42 = vld [vmem:[%s829_s5 + $0x8] sm:$0xff]   ;;  %v588_v44 = vld [vmem:[%s829_s5] sm:$0xff]  }
  0x29   :  { %516 = vmatprep.subr.bf16.mxu0 %v577_v25  ;;  %v133_v48 = vld [vmem:[#allocation5] sm:$0x3]  ;;  %v493_v0 = vld [vmem:[%s830_s6] ss:$0 sm:$0xff]  ;;  %s464_s6 = sshll.u32 %s666_s3, 4  ;;  %s465_s6 = int_to_ptr.vmem [resolvable:$true] %s464_s6 }
  0x2a   :  { %v138_v50 = vrot.slane %v133_v48, %v137_v47  ;;  %v142_v51 = vrot.slane %v133_v48, %v141_v49  ;;  %s633_s25 = scalar_lea.vmem %s465_s6, 128  ;;  %p638_p11 = scmp.lt.s32.totalorder %s465_s6, %s465_s6 }
  0x2b   :  { %232 = vmatpush1.bf16.msra.mxu1 %v560_v11  ;;  %p634_p10 = scmp.ne.s32.totalorder %s465_s6, %s633_s25  ;;  %p639_p12 = scmp.lt.s32.totalorder %s633_s25, %s633_s25 }
  0x2c   :  { %233 = vmatprep.subr.bf16.mxu1 %v561_v12  ;;  %517 = vmatpush3.bf16.msra.mxu0 %v578_v26 }
  0x2d   :  { %518 = vmatprep.subr.bf16.mxu0 %v579_v27  ;;  %p640_p13 = por %p639_p12, %p638_p11 }
  0x2f   :  { %234 = vmatpush1.bf16.msra.mxu1 %v563_v13  ;;  %p641_p0 = pnand %p640_p13, %p634_p10 }
  0x30   :  { %235 = vmatprep.subr.bf16.mxu1 %v564_v14  ;;  %519 = vmatpush3.bf16.msra.mxu0 %v580_v28 }
  0x31   :  { %520 = vmatprep.subr.bf16.mxu0 %v581_v29 }
  0x33   :  { %236 = vmatpush1.bf16.msra.mxu1 %v566_v15 }
  0x34   :  { %237 = vmatprep.subr.bf16.mxu1 %v567_v16  ;;  %521 = vmatpush3.bf16.msra.mxu0 %v582_v30 }
  0x35   :  { %522 = vmatprep.subr.bf16.mxu0 %v583_v31 }
  0x37   :  { %238 = vmatpush1.bf16.msra.mxu1 %v569_v17 }
  0x38   :  { %239 = vmatprep.subr.bf16.mxu1 %v570_v18  ;;  %523 = vmatpush3.bf16.msra.mxu0 %v584_v32 }
  0x39   :  { %524 = vmatprep.subr.bf16.mxu0 %v585_v41 }
  0x3b   :  { %240 = vmatpush1.bf16.msra.mxu1 %v572_v19 }
  0x3c   :  { %525 = vmatpush3.bf16.msra.mxu0 %v586_v42 }
  0x3d   :  { %526 = vmatprep.subr.bf16.mxu0 %v587_v43 }
  0x40   :  { %527 = vmatpush3.bf16.msra.mxu0 %v588_v44 }
  0xe1   :  { %v109_v34 = vpop.f32.mrf.mxu0 }
  0xe2   :  { %v110_v35 = vadd.f32 %v474_v33, %v109_v34 }
  0xe3   :  { %v538_v36 = vpop.f32.mrf.mxu0 }
  0xe4   :  { %v115_v37 = vmax.f32 %v110_v35, 0.0 }
  0xe5   :  { %v112_v38 = vpop.f32.mrf.mxu0 }
  0xe6   :  { %v116_v39 = vpack.c.bf16 %v115_v37, %v115_v37 }
  0xe7   :  { %v539_v40 = vpop.f32.mrf.mxu0 }
  0xe8   :  { %258 = vmatmul.mubr.bf16.vlgmr.msra.gmra.mxu1 %v116_v39 }
 0x1a8   :  { %v259_v52 = vpop.f32.mrf.mxu1 }
 0x1a9   :  { %v260_v53 = vadd.f32 %v259_v52, %v138_v50 }
 0x1aa   :  { %v261_v54 = vpop.f32.mrf.mxu1 }
 0x1ab   :  { %v262_v55 = vadd.f32 %v261_v54, %v142_v51  ;;  %v266_v56 = vmax.f32 %v260_v53, 0.0 }
 0x1ac   :  { %v263_v57 = vpop.f32.mrf.mxu1 }
 0x1ad   :  { %v267_v58 = vmax.f32 %v262_v55, 0.0  ;;  %v268_v61 = vpack.c.bf16 %v266_v56, %v266_v56 }
 0x1ae   :  { %v264_v59 = vpop.f32.mrf.mxu1 }
 0x1af   :  { %v269_v60 = vpack.c.bf16 %v267_v58, %v267_v58 }
 0x1b1   :  { %437 = vmatprep.mubr.bf16.mxu0 %v269_v60 }
 0x1b2   :  { %438 = vmatmul.mubr.bf16.vlgmr.msra.gmra.mxu0 %v268_v61 }
 0x272   :  { %v528_v62 = vpop.f32.mrf.mxu0 }
 0x274   :  { %v529_v63 = vpop.f32.mrf.mxu0 }
 0x275   :  { %v530_v1 = vadd.f32 %v529_v63, %v528_v62 }
 0x276   :  { %v531_v2 = vpop.f32.mrf.mxu0 }
 0x277   :  { %v440_v3 = vadd.f32 %v530_v1, %v493_v0 }
 0x278   :  { %v532_v4 = vpop.f32.mrf.mxu0 }
 0x279   :  { %v446_v5 = vsel %vm445_vm2, %v440_v3, -inf }
 0x27a   :  { %447 = vmax.xlane.f32.xlu0 %v446_v5 }
 0x303   :  { %v448_v6 = vpop.xlane.xlu0 %447 }
 0x304   :  { %v449_v7 = vsub.f32 %v440_v3, %v448_v6 }
 0x306   :  { %v450_v8 = vmul.f32 1.442695, %v449_v7 }
 0x308   :  { %589 = vpow2.f32 %v450_v8 }
 0x315   :  { %v590_v9 = vpop.eup %589 }
 0x316   :  { %v452_v10 = vsel %vm445_vm2, %v590_v9, 0.0 }
 0x317   :  { %453 = vadd.xlane.f32.xlu0 %v452_v10 }
 0x3a0   :  { %v454_v11 = vpop.xlane.xlu0 %453 }
 0x3a1   :  { %591 = vrcp.f32 %v454_v11 }
 0x3ae   :  { %v592_v12 = vpop.eup %591 }
 0x3af   :  { %v456_v13 = vmul.f32 %v592_v12, %v590_v9 }
 0x3b1   :  { %457 = vst.msk [vmem:[#allocation7] sm:$0xff] %vm445_vm2, %v456_v13 }
 0x3b2   :  { %644 = shalt.err (!%p641_p0)
}
 0x3b3   :  { %467 = dma.vmem_to_hbm [thread:$0]  %s465_s6, 128, %s831_s7, [#allocation4]  }
 0x3b4   :  { %657 = dma.done.wait [#allocation4], 128  }
 0x3b5   :  { %658 = vsyncadd [#allocation4], 4294967168 }
 0x3b6   :  { %471 = vsyncpa [#allocation3], 1 }
 0x3b7   :  { %472 = vsyncpa [#allocation6], 1 }
 0x3b8   :  { %473 = vsyncpa [#allocation4], 1 }

</bundles_post_ra>
